<compile_context>
chip_gen: v7x
topology: tpu7x:2x2x1
jax: 0.10.0
libtpu: 0.0.40
codegen_flags: <defaults>
</compile_context>

<pallas_src>
import jax
import jax.numpy as jnp
from jax.experimental import pallas as pl
from jax.experimental.pallas import tpu as pltpu

N_VERT = 128   # number of 3D face vertices
N_ID = 30      # identity basis size  (alpha has 30 entries)
N_EX = 20      # expression basis size (delta has 20 entries)
N_LMS = 8      # number of landmarks


# ---------------------------------------------------------------------------
# Pallas kernel: fused basis blend (1 MXU matmul) + landmark gather + MVP + divide
# ---------------------------------------------------------------------------
def _face_kernel(a_ref, w_ref, mt_ref, lms_ref, out_ref):
    n_vert = a_ref.shape[0]
    n_lms = lms_ref.shape[0]

    # (1) single fused basis-blend matmul:
    #     G = [mean | comp_flat] @ W  -> (N, 3)      (one MXU pass, contraction = 153)
    g = jnp.dot(a_ref[...], w_ref[...], preferred_element_type=jnp.float32)

    # (2) landmark gather BEFORE projection / divide, as a one-hot matmul (MXU-friendly)
    col = jax.lax.broadcasted_iota(jnp.int32, (n_lms, n_vert), 1)
    onehot = (col == lms_ref[...]).astype(jnp.float32)              # (L, N)
    lg = jnp.dot(onehot, g, preferred_element_type=jnp.float32)     # (L, 3)

    # (3) MVP on the L gathered vertices only: face = [lg, 1] @ M^T  (exact f32 VPU broadcast)
    mt = mt_ref[...]                                                # (4, 4) = M^T
    face = (lg[:, 0:1] * mt[0:1, :] + lg[:, 1:2] * mt[1:2, :]
            + lg[:, 2:3] * mt[2:3, :] + mt[3:4, :])                 # (L, 4)

    # (4) homogeneous divide on (L, 4) only; approx reciprocal runs on the EUP slot
    out_ref[...] = face[:, 0:2] * pl.reciprocal(face[:, 3:4], approx=True)


# ---------------------------------------------------------------------------
# Plain-JAX glue: build the 4x4 MVP matrix from the (omega, tau) parameters
# ---------------------------------------------------------------------------
def _rotation(omega_deg):
    a = jnp.deg2rad(omega_deg.astype(jnp.float32))
    cx, cy, cz = jnp.cos(a)
    sx, sy, sz = jnp.sin(a)
    zero, one = jnp.zeros(()), jnp.ones(())
    rx = jnp.stack([jnp.stack([one, zero, zero]),
                    jnp.stack([zero, cx, -sx]),
                    jnp.stack([zero, sx, cx])])
    ry = jnp.stack([jnp.stack([cy, zero, sy]),
                    jnp.stack([zero, one, zero]),
                    jnp.stack([-sy, zero, cy])])
    rz = jnp.stack([jnp.stack([cz, -sz, zero]),
                    jnp.stack([sz, cz, zero]),
                    jnp.stack([zero, zero, one])])
    return rz @ ry @ rx


def _transform(omega_deg, tau):
    r = _rotation(omega_deg)
    top = jnp.concatenate([r, tau.astype(jnp.float32)[:, None]], axis=1)
    bot = jnp.array([[0.0, 0.0, 0.0, 1.0]], jnp.float32)
    return jnp.concatenate([top, bot], axis=0)


def _projection(near=0.1, far=100.0, fovy_deg=60.0, aspect=1.0):
    t = near * jnp.tan(jnp.deg2rad(jnp.float32(fovy_deg)) / 2.0)
    r = t * aspect
    return jnp.array([[near / r, 0.0, 0.0, 0.0],
                      [0.0, near / t, 0.0, 0.0],
                      [0.0, 0.0, -(far + near) / (far - near),
                       -2.0 * far * near / (far - near)],
                      [0.0, 0.0, -1.0, 0.0]], jnp.float32)


def _viewport(w=224.0, h=224.0):
    return jnp.array([[w / 2.0, 0.0, 0.0, w / 2.0],
                      [0.0, -h / 2.0, 0.0, h / 2.0],
                      [0.0, 0.0, 0.5, 0.5],
                      [0.0, 0.0, 0.0, 1.0]], jnp.float32)


def _mvp_matrix(omega, tau):
    return _viewport() @ _projection() @ _transform(omega, tau)


# ---------------------------------------------------------------------------
# Init-time preparation: the id/ex morphable-model tensors are constants, so the
# per-call transpose/cast/flatten of the PCA components is hoisted out of forward.
# ---------------------------------------------------------------------------
def prepare_face_basis(id_tuple, ex_tuple):
    mean_id, comp_id, var_id = id_tuple
    mean_ex, comp_ex, var_ex = ex_tuple
    cols = [(mean_id + mean_ex).astype(jnp.float32)]                # (N, 3)
    cols += [comp_id[:, c, :].astype(jnp.float32) for c in range(3)]  # 3 x (N, N_ID)
    cols += [comp_ex[:, c, :].astype(jnp.float32) for c in range(3)]  # 3 x (N, N_EX)
    a = jnp.concatenate(cols, axis=1)                               # (N, 3 + 3*N_ID + 3*N_EX)
    return a, var_id.astype(jnp.float32), var_ex.astype(jnp.float32)


# ---------------------------------------------------------------------------
# Wrapper (= Model.forward)
# ---------------------------------------------------------------------------
@jax.jit
def model_forward(params, basis, lms):
    alpha, delta, omega, tau = params
    a, var_id, var_ex = basis

    # trainable-parameter-dependent weights: block-diagonal basis weights (153, 3)
    w_id = (alpha * var_id).astype(jnp.float32)[:, None]            # (N_ID, 1)
    w_ex = (delta * var_ex).astype(jnp.float32)[:, None]            # (N_EX, 1)
    eye3 = jnp.eye(3, dtype=jnp.float32)
    w_blocks = [eye3]                                               # mean passes straight through
    w_blocks += [w_id * eye3[c:c + 1, :] for c in range(3)]
    w_blocks += [w_ex * eye3[c:c + 1, :] for c in range(3)]
    w_g = jnp.concatenate(w_blocks, axis=0)                         # (3 + 3*N_ID + 3*N_EX, 3)

    mt = jnp.transpose(_mvp_matrix(omega, tau)).astype(jnp.float32)  # (4, 4) = M^T

    n_lms = lms.shape[0]
    vmem = pl.BlockSpec(memory_space=pltpu.MemorySpace.VMEM)
    return pl.pallas_call(
        _face_kernel,
        out_shape=jax.ShapeDtypeStruct((n_lms, 2), jnp.float32),
        in_specs=[vmem, vmem, vmem, vmem],
        out_specs=vmem,
    )(a, w_g, mt, lms.astype(jnp.int32).reshape(-1, 1))


# ---------------------------------------------------------------------------
if __name__ == "__main__":
    key = jax.random.PRNGKey(0)
    ks = jax.random.split(key, 9)
    n, l = N_VERT, N_LMS

    # inputs (the `id`, `ex`, `lms` arguments of forward)
    mean_id = jax.random.uniform(ks[0], (n, 3), jnp.float32, -0.5, 0.5)
    comp_id = jax.random.normal(ks[1], (n, 3, N_ID), jnp.float32) * 0.05
    var_id = jax.random.uniform(ks[2], (N_ID,), jnp.float32, 0.1, 1.0)
    mean_ex = jax.random.uniform(ks[3], (n, 3), jnp.float32, -0.1, 0.1)
    comp_ex = jax.random.normal(ks[4], (n, 3, N_EX), jnp.float32) * 0.02
    var_ex = jax.random.uniform(ks[5], (N_EX,), jnp.float32, 0.1, 1.0)
    lms = jax.random.randint(ks[6], (l,), 0, n, jnp.int32)   # must be in [0, N_VERT)

    # parameters (Model.__init__): alpha~U(range_alpha), delta~U(range_delta),
    # omega=args.angles (degrees), tau=args.translation
    alpha = jax.random.uniform(ks[7], (N_ID,), jnp.float32, -1.0, 1.0)
    delta = jax.random.uniform(ks[8], (N_EX,), jnp.float32, -1.0, 1.0)
    omega = jnp.array([10.0, 20.0, 30.0], jnp.float32)
    tau = jnp.array([0.0, 0.0, -5.0], jnp.float32)

    # init-time prep (done once; id/ex are model constants), then forward
    basis = prepare_face_basis((mean_id, comp_id, var_id), (mean_ex, comp_ex, var_ex))
    preds = model_forward((alpha, delta, omega, tau), basis, lms)
    preds = jax.block_until_ready(preds)

    # pure-JAX reference for verification
    g = mean_id + comp_id @ (alpha * var_id) + mean_ex + comp_ex @ (delta * var_ex)
    m = _mvp_matrix(omega, tau)
    gh = jnp.concatenate([g, jnp.ones((n, 1), jnp.float32)], axis=1)
    face = gh @ m.T
    face2d = face[:, :2] / face[:, 3:4]
    ref = face2d[lms]

    assert preds.shape == (l, 2), preds.shape
    assert jnp.allclose(preds, ref, rtol=2e-2, atol=2e-2), (preds, ref)
    print("KERNEL_OK")
</pallas_src>

<mosaic_0001>
module attributes {stable_mosaic.version = 11 : i64} {
  func.func @_face_kernel(%arg0: memref<128x153xf32, #tpu.memory_space<vmem>>, %arg1: memref<153x3xf32, #tpu.memory_space<vmem>>, %arg2: memref<4x4xf32, #tpu.memory_space<vmem>>, %arg3: memref<8x1xi32, #tpu.memory_space<vmem>>, %arg4: memref<8x2xf32, #tpu.memory_space<vmem>>) attributes {dimension_semantics = [], scalar_prefetch = 0 : i64, scratch_operands = 0 : i64, tpu.core_type = #tpu.core_type<tc>} {
    %c0 = arith.constant 0 : index
    %c0_0 = arith.constant 0 : index
    %0 = vector.load %arg0[%c0, %c0_0] : memref<128x153xf32, #tpu.memory_space<vmem>>, vector<128x153xf32>
    %c0_1 = arith.constant 0 : index
    %c0_2 = arith.constant 0 : index
    %1 = vector.load %arg1[%c0_1, %c0_2] : memref<153x3xf32, #tpu.memory_space<vmem>>, vector<153x3xf32>
    %cst = arith.constant dense<0.000000e+00> : vector<128x3xf32>
    %2 = tpu.matmul %0, %1, %cst {dimension_numbers = #tpu.dot_dimension_numbers<[1], [0], [0], [1], [0, 0, 1, 1], [], []>} : vector<128x153xf32>, vector<153x3xf32>, vector<128x3xf32> -> vector<128x3xf32>
    %3 = tpu.iota {dimensions = array<i32: 1>} : vector<8x128xi32>
    %c0_3 = arith.constant 0 : index
    %c0_4 = arith.constant 0 : index
    %4 = vector.load %arg3[%c0_3, %c0_4] : memref<8x1xi32, #tpu.memory_space<vmem>>, vector<8x1xi32>
    %5 = vector.broadcast %4 : vector<8x1xi32> to vector<8x128xi32>
    %6 = arith.cmpi eq, %3, %5 : vector<8x128xi32>
    %7 = arith.extui %6 : vector<8x128xi1> to vector<8x128xi32>
    %8 = arith.sitofp %7 : vector<8x128xi32> to vector<8x128xf32>
    %cst_5 = arith.constant dense<0.000000e+00> : vector<8x3xf32>
    %9 = tpu.matmul %8, %2, %cst_5 {dimension_numbers = #tpu.dot_dimension_numbers<[1], [0], [0], [1], [0, 0, 1, 1], [], []>} : vector<8x128xf32>, vector<128x3xf32>, vector<8x3xf32> -> vector<8x3xf32>
    %c0_6 = arith.constant 0 : index
    %c0_7 = arith.constant 0 : index
    %10 = vector.load %arg2[%c0_6, %c0_7] : memref<4x4xf32, #tpu.memory_space<vmem>>, vector<4x4xf32>
    %11 = vector.extract_strided_slice %9 {offsets = [0, 0], sizes = [8, 1], strides = [1, 1]} : vector<8x3xf32> to vector<8x1xf32>
    %12 = vector.extract_strided_slice %10 {offsets = [0, 0], sizes = [1, 4], strides = [1, 1]} : vector<4x4xf32> to vector<1x4xf32>
    %13 = vector.broadcast %11 : vector<8x1xf32> to vector<8x4xf32>
    %14 = vector.broadcast %12 : vector<1x4xf32> to vector<8x4xf32>
    %15 = arith.mulf %13, %14 : vector<8x4xf32>
    %16 = vector.extract_strided_slice %9 {offsets = [0, 1], sizes = [8, 1], strides = [1, 1]} : vector<8x3xf32> to vector<8x1xf32>
    %17 = vector.extract_strided_slice %10 {offsets = [1, 0], sizes = [1, 4], strides = [1, 1]} : vector<4x4xf32> to vector<1x4xf32>
    %18 = vector.broadcast %16 : vector<8x1xf32> to vector<8x4xf32>
    %19 = vector.broadcast %17 : vector<1x4xf32> to vector<8x4xf32>
    %20 = arith.mulf %18, %19 : vector<8x4xf32>
    %21 = arith.addf %15, %20 : vector<8x4xf32>
    %22 = vector.extract_strided_slice %9 {offsets = [0, 2], sizes = [8, 1], strides = [1, 1]} : vector<8x3xf32> to vector<8x1xf32>
    %23 = vector.extract_strided_slice %10 {offsets = [2, 0], sizes = [1, 4], strides = [1, 1]} : vector<4x4xf32> to vector<1x4xf32>
    %24 = vector.broadcast %22 : vector<8x1xf32> to vector<8x4xf32>
    %25 = vector.broadcast %23 : vector<1x4xf32> to vector<8x4xf32>
    %26 = arith.mulf %24, %25 : vector<8x4xf32>
    %27 = arith.addf %21, %26 : vector<8x4xf32>
    %28 = vector.extract_strided_slice %10 {offsets = [3, 0], sizes = [1, 4], strides = [1, 1]} : vector<4x4xf32> to vector<1x4xf32>
    %29 = vector.broadcast %28 : vector<1x4xf32> to vector<8x4xf32>
    %30 = arith.addf %27, %29 : vector<8x4xf32>
    %31 = vector.extract_strided_slice %30 {offsets = [0, 0], sizes = [8, 2], strides = [1, 1]} : vector<8x4xf32> to vector<8x2xf32>
    %32 = vector.extract_strided_slice %30 {offsets = [0, 3], sizes = [8, 1], strides = [1, 1]} : vector<8x4xf32> to vector<8x1xf32>
    %33 = tpu.reciprocal %32 {approx = true} : vector<8x1xf32> -> vector<8x1xf32>
    %34 = vector.broadcast %33 : vector<8x1xf32> to vector<8x2xf32>
    %35 = arith.mulf %31, %34 : vector<8x2xf32>
    %c0_8 = arith.constant 0 : index
    %c0_9 = arith.constant 0 : index
    %36 = vector.load %arg4[%c0_8, %c0_9] : memref<8x2xf32, #tpu.memory_space<vmem>>, vector<8x2xf32>
    tpu.vector_store %arg4[%c0_8, %c0_9], %35 {strides = array<i32>} : memref<8x2xf32, #tpu.memory_space<vmem>>, vector<8x2xf32>,
    return
  }
}

</mosaic_0001>

<bundles_post_ra>
// kernel: mul.46
= control target key start
LH: loop header
LB: loop body
LE: loop exit
PB: predicated region body
PF: predicated region fallthrough
CT: control target
= control target key end

     0   :  { %s34_s0 = inlined_call_operand.vmem [shape: f32[20], index: 0, kind: input, shape index: {}]   ;;  %s35_s1 = inlined_call_operand.vmem [shape: f32[20], index: 1, kind: input, shape index: {}]   ;;  %s36_s2 = inlined_call_operand.vmem [shape: f32[20], index: 2, kind: output, shape index: {}]  }
   0x1   :  { %v3_v0 = vld [vmem:[%s34_s0] sm:$0x1] }
   0x2   :  { %v4_v1 = vld [vmem:[%s35_s1] sm:$0x1] }
   0x3   :  { %v7_v2 = vmul.f32 %v4_v1, %v3_v0 }
   0x5   :  { %9 = vst [vmem:[%s36_s2] sm:$0x1] %v7_v2 }

// kernel: mul.45
= control target key start
LH: loop header
LB: loop body
LE: loop exit
PB: predicated region body
PF: predicated region fallthrough
CT: control target
= control target key end

     0   :  { %s34_s0 = inlined_call_operand.vmem [shape: f32[30], index: 0, kind: input, shape index: {}]   ;;  %s35_s1 = inlined_call_operand.vmem [shape: f32[30], index: 1, kind: input, shape index: {}]   ;;  %s36_s2 = inlined_call_operand.vmem [shape: f32[30], index: 2, kind: output, shape index: {}]  }
   0x1   :  { %v3_v0 = vld [vmem:[%s34_s0] sm:$0x1] }
   0x2   :  { %v4_v1 = vld [vmem:[%s35_s1] sm:$0x1] }
   0x3   :  { %v7_v2 = vmul.f32 %v4_v1, %v3_v0 }
   0x5   :  { %9 = vst [vmem:[%s36_s2] sm:$0x1] %v7_v2 }

// kernel: model_forward.1
= control target key start
LH: loop header
LB: loop body
LE: loop exit
PB: predicated region body
PF: predicated region fallthrough
CT: control target
= control target key end

     0   :  { %v536_v0 = vmov 0.0|0.0   ;;  %v537_v6 = vmov 0   ;;  %vm69_vm0 = vcmask 203776   ;;  %vm118_vm1 = vcmask 1040384   ;;  %s769_s1 = inlined_call_operand.vmem [shape: f32[153,3], index: 1, kind: input, shape index: {}]   ;;  %s770_s0 = inlined_call_operand.vmem [shape: f32[128,153], index: 0, kind: input, shape index: {}]   ;;  %s771_s3 = inlined_call_operand.vmem [shape: s32[8,1], index: 3, kind: input, shape index: {}]   ;;  %s772_s2 = inlined_call_operand.vmem [shape: f32[4,4], index: 2, kind: input, shape index: {}]   ;;  %s773_s4 = inlined_call_operand.vmem [shape: f32[8,2], index: 4, kind: output, shape index: {}]  }
   0x1   :  { %466 = vmatprep.subr.bf16.mxu0 %v536_v0  ;;  %v49_v1 = vld [vmem:[%s769_s1] sm:$0xff]  ;;  %v50_v2 = vld [vmem:[%s769_s1 + $0x8] sm:$0xff]  ;;  %v51_v3 = vld [vmem:[%s769_s1 + $0x10] sm:$0xff]  ;;  %497 = vmatprep.subr.bf16.mxu1 %v536_v0  ;;  %vm538_vm2 = vmmov 1   ;;  %vm539_vm4 = vmmov 0   ;;  %vm389_vm6 = vcmask 15360  }
   0x2   :  { %v467_v4 = vpack.c.bf16 %v50_v2, %v49_v1  ;;  %v52_v5 = vld [vmem:[%s769_s1 + $0x18] sm:$0xff]  ;;  %530 = vset.pattern.permute.xlu0 %v537_v6  ;;  %v53_v8 = vld [vmem:[%s769_s1 + $0x20] sm:$0xff]  ;;  %v54_v9 = vld [vmem:[%s769_s1 + $0x28] sm:$0xff]  ;;  %v540_v2 = vmov 0.0  }
   0x3   :  { %v470_v7 = vpack.c.bf16 %v52_v5, %v51_v3  ;;  %v473_v10 = vpack.c.bf16 %v54_v9, %v53_v8  ;;  %v18_v11 = vld [vmem:[%s770_s0 + $0x8] sm:$0xff]  ;;  %v55_v12 = vld [vmem:[%s769_s1 + $0x30] sm:$0xff]  ;;  %v56_v13 = vld [vmem:[%s769_s1 + $0x38] sm:$0xff]  ;;  %463 = vmatprep.mubr.msk.f32.mxu1 %vm539_vm4, %v540_v2  ;;  %v541_v3 = vmov 1  }
   0x4   :  { %468 = vmatpush1.bf16.msra.mxu0 %v467_v4  ;;  %396 = vmatprep.mubr.msk.f32.mxu0 %vm69_vm0, %v18_v11  ;;  %v476_v14 = vpack.c.bf16 %v56_v13, %v55_v12  ;;  %v57_v15 = vld [vmem:[%s769_s1 + $0x40] sm:$0xff]  ;;  %v58_v16 = vld [vmem:[%s769_s1 + $0x48] sm:$0xff]  ;;  %v59_v18 = vld [vmem:[%s769_s1 + $0x50] sm:$0xff] }
   0x5   :  { %469 = vmatprep.subr.bf16.mxu0 %v536_v0  ;;  %v479_v17 = vpack.c.bf16 %v58_v16, %v57_v15  ;;  %v60_v19 = vld [vmem:[%s769_s1 + $0x58] sm:$0xff]  ;;  %v269_v20 = vld [vmem:[%s771_s3] sm:$0xff]  ;;  %v62_v23 = vld [vmem:[%s769_s1 + $0x68] sm:$0xff]  ;;  %531 = vset.pattern.permute.xlu1 %v541_v3 }
   0x6   :  { %271 = vperm.xlu0 %530, %v269_v20   ;;  %v482_v21 = vpack.c.bf16 %v60_v19, %v59_v18  ;;  %v61_v22 = vld [vmem:[%s769_s1 + $0x60] sm:$0xff]  ;;  %v63_v25 = vld [vmem:[%s769_s1 + $0x70] sm:$0xff]  ;;  %v64_v26 = vld [vmem:[%s769_s1 + $0x78] sm:$0xff] }
   0x7   :  { %v485_v24 = vpack.c.bf16 %v62_v23, %v61_v22  ;;  %v488_v27 = vpack.c.bf16 %v64_v26, %v63_v25  ;;  %v65_v28 = vld [vmem:[%s769_s1 + $0x80] sm:$0xff]  ;;  %v66_v29 = vld [vmem:[%s769_s1 + $0x88] sm:$0xff]  ;;  %v67_v31 = vld [vmem:[%s769_s1 + $0x90] sm:$0xff] }
   0x8   :  { %471 = vmatpush1.bf16.msra.mxu0 %v470_v7  ;;  %v491_v30 = vpack.c.bf16 %v66_v29, %v65_v28  ;;  %v68_v32 = vld [vmem:[%s769_s1 + $0x98] sm:$0x1]  ;;  %vm495_vm3 = vmpackc.low %vm118_vm1, %vm538_vm2  ;;  %v17_v34 = vld [vmem:[%s770_s0] sm:$0xff] }
   0x9   :  { %472 = vmatprep.subr.bf16.mxu0 %v536_v0  ;;  %v494_v33 = vpack.c.bf16 %v68_v32, %v67_v31  ;;  %v20_v35 = vld [vmem:[%s770_s0 + $0x18] sm:$0xff]  ;;  %v19_v36 = vld [vmem:[%s770_s0 + $0x10] sm:$0xff]  ;;  %v22_v37 = vld [vmem:[%s770_s0 + $0x28] sm:$0xff] }
   0xa   :  { %v21_v38 = vld [vmem:[%s770_s0 + $0x20] sm:$0xff]  ;;  %v24_v39 = vld [vmem:[%s770_s0 + $0x38] sm:$0xff]  ;;  %v23_v40 = vld [vmem:[%s770_s0 + $0x30] sm:$0xff] }
   0xb   :  { %v26_v41 = vld [vmem:[%s770_s0 + $0x48] sm:$0xff]  ;;  %v25_v42 = vld [vmem:[%s770_s0 + $0x40] sm:$0xff]  ;;  %v28_v43 = vld [vmem:[%s770_s0 + $0x58] sm:$0xff] }
   0xc   :  { %474 = vmatpush1.bf16.msra.mxu0 %v473_v10  ;;  %v27_v44 = vld [vmem:[%s770_s0 + $0x50] sm:$0xff]  ;;  %v30_v45 = vld [vmem:[%s770_s0 + $0x68] sm:$0xff]  ;;  %v29_v46 = vld [vmem:[%s770_s0 + $0x60] sm:$0xff] }
   0xd   :  { %475 = vmatprep.subr.bf16.mxu0 %v536_v0  ;;  %v32_v47 = vld [vmem:[%s770_s0 + $0x78] sm:$0xff]  ;;  %v31_v48 = vld [vmem:[%s770_s0 + $0x70] sm:$0xff]  ;;  %v34_v49 = vld [vmem:[%s770_s0 + $0x88] sm:$0xff] }
   0xe   :  { %v33_v50 = vld [vmem:[%s770_s0 + $0x80] sm:$0xff]  ;;  %v36_v51 = vld [vmem:[%s770_s0 + $0x98] sm:$0xff]  ;;  %v35_v52 = vld [vmem:[%s770_s0 + $0x90] sm:$0xff] }
   0xf   :  { %v38_v53 = vld [vmem:[%s770_s0 + $0xa8] sm:$0xff]  ;;  %v37_v54 = vld [vmem:[%s770_s0 + $0xa0] sm:$0xff]  ;;  %v40_v55 = vld [vmem:[%s770_s0 + $0xb8] sm:$0xff] }
  0x10   :  { %477 = vmatpush1.bf16.msra.mxu0 %v476_v14  ;;  %v39_v56 = vld [vmem:[%s770_s0 + $0xb0] sm:$0xff]  ;;  %v42_v57 = vld [vmem:[%s770_s0 + $0xc8] sm:$0xff]  ;;  %v41_v58 = vld [vmem:[%s770_s0 + $0xc0] sm:$0xff] }
  0x11   :  { %478 = vmatprep.subr.bf16.mxu0 %v536_v0  ;;  %v44_v59 = vld [vmem:[%s770_s0 + $0xd8] sm:$0xff]  ;;  %v43_v60 = vld [vmem:[%s770_s0 + $0xd0] sm:$0xff]  ;;  %v46_v61 = vld [vmem:[%s770_s0 + $0xe8] sm:$0xff] }
  0x12   :  { %v45_v62 = vld [vmem:[%s770_s0 + $0xe0] sm:$0xff]  ;;  %v48_v63 = vld [vmem:[%s770_s0 + $0xf8] sm:$0xff]  ;;  %v47_v1 = vld [vmem:[%s770_s0 + $0xf0] sm:$0xff] }
  0x14   :  { %480 = vmatpush1.bf16.msra.mxu0 %v479_v17 }
  0x15   :  { %481 = vmatprep.subr.bf16.mxu0 %v536_v0 }
  0x18   :  { %483 = vmatpush1.bf16.msra.mxu0 %v482_v21 }
  0x19   :  { %484 = vmatprep.subr.bf16.mxu0 %v536_v0 }
  0x1c   :  { %486 = vmatpush1.bf16.msra.mxu0 %v485_v24 }
  0x1d   :  { %487 = vmatprep.subr.bf16.mxu0 %v536_v0 }
  0x20   :  { %489 = vmatpush1.bf16.msra.mxu0 %v488_v27 }
  0x21   :  { %490 = vmatprep.subr.bf16.mxu0 %v536_v0 }
  0x24   :  { %492 = vmatpush1.bf16.msra.mxu0 %v491_v30 }
  0x25   :  { %493 = vmatprep.subr.bf16.mxu0 %v536_v0 }
  0x28   :  { %496 = vmatpush1.bf16.msk.msra.mxu0 %vm495_vm3, %v494_v33 }
  0x2b   :  { %187 = vmatmul.mubr.f32.vlgmr.msra.gmra.mrb[0].mxu0 %v17_v34 }
  0x2c   :  { %397 = vmatprep.mubr.msk.f32.mxu0 %vm69_vm0, %v20_v35 }
  0x2f   :  { %192 = vmatmul.mubr.f32.gmra.mrb[2].mxu0 %v19_v36 }
  0x30   :  { %398 = vmatprep.mubr.msk.f32.mxu0 %vm69_vm0, %v22_v37 }
  0x33   :  { %197 = vmatmul.mubr.f32.gmra.mrb[4].mxu0 %v21_v38 }
  0x34   :  { %399 = vmatprep.mubr.msk.f32.mxu0 %vm69_vm0, %v24_v39  ;;  %v267_v39 = vlaneseq }
  0x37   :  { %202 = vmatmul.mubr.f32.gmra.mrb[6].mxu0 %v23_v40 }
  0x38   :  { %400 = vmatprep.mubr.msk.f32.mxu0 %vm69_vm0, %v26_v41 }
  0x3b   :  { %207 = vmatmul.mubr.f32.gmra.mrb[8].mxu0 %v25_v42  ;;  %v268_v42 = vand.u32 127, %v267_v39 }
  0x3c   :  { %401 = vmatprep.mubr.msk.f32.mxu0 %vm69_vm0, %v28_v43 }
  0x3f   :  { %212 = vmatmul.mubr.f32.gmra.mrb[10].mxu0 %v27_v44 }
  0x40   :  { %402 = vmatprep.mubr.msk.f32.mxu0 %vm69_vm0, %v30_v45 }
  0x43   :  { %217 = vmatmul.mubr.f32.gmra.mrb[12].mxu0 %v29_v46 }
  0x44   :  { %403 = vmatprep.mubr.msk.f32.mxu0 %vm69_vm0, %v32_v47  ;;  %v542_v47 = vmov 1.0  }
  0x47   :  { %222 = vmatmul.mubr.f32.gmra.mrb[14].mxu0 %v31_v48 }
  0x48   :  { %404 = vmatprep.mubr.msk.f32.mxu0 %vm69_vm0, %v34_v49 }
  0x4b   :  { %227 = vmatmul.mubr.f32.gmra.mrb[16].mxu0 %v33_v50  ;;  %v543_v50 = vmov 2  }
  0x4c   :  { %405 = vmatprep.mubr.msk.f32.mxu0 %vm69_vm0, %v36_v51  ;;  %v544_v51 = vmov 3  }
  0x4f   :  { %232 = vmatmul.mubr.f32.gmra.mrb[18].mxu0 %v35_v52 }
  0x50   :  { %406 = vmatprep.mubr.msk.f32.mxu0 %vm69_vm0, %v38_v53 }
  0x53   :  { %237 = vmatmul.mubr.f32.gmra.mrb[20].mxu0 %v37_v54  ;;  %v346_v54 = vld [vmem:[%s772_s2] sm:$0xf] }
  0x54   :  { %407 = vmatprep.mubr.msk.f32.mxu0 %vm69_vm0, %v40_v55 }
  0x57   :  { %242 = vmatmul.mubr.f32.gmra.mrb[22].mxu0 %v39_v56 }
  0x58   :  { %408 = vmatprep.mubr.msk.f32.mxu0 %vm69_vm0, %v42_v57 }
  0x5b   :  { %247 = vmatmul.mubr.f32.gmra.mrb[24].mxu0 %v41_v58 }
  0x5c   :  { %409 = vmatprep.mubr.msk.f32.mxu0 %vm69_vm0, %v44_v59 }
  0x5f   :  { %252 = vmatmul.mubr.f32.gmra.mrb[26].mxu0 %v43_v60 }
  0x60   :  { %410 = vmatprep.mubr.msk.f32.mxu0 %vm69_vm0, %v46_v61 }
  0x63   :  { %257 = vmatmul.mubr.f32.gmra.mrb[28].mxu0 %v45_v62 }
  0x64   :  { %411 = vmatprep.mubr.msk.f32.mxu0 %vm69_vm0, %v48_v63 }
  0x67   :  { %262 = vmatmul.mubr.f32.gmra.mrb[30].mxu0 %v47_v1 }
  0x85   :  { %v272_v44 = vpop.permute.xlu0 %271 }
  0x86   :  { %vm273_vm5 = vcmp.eq.s32.totalorder %v268_v42, %v272_v44 }
  0xfe   :  { %v188_v4 = vpop.f32.mrb[0].mxu0 }
  0xff   :  { %v190_v5 = vpop.f32.mrb[1].mxu0 }
 0x102   :  { %v193_v6 = vpop.f32.mrb[2].mxu0 }
 0x103   :  { %v498_v7 = vpack.c.bf16 %v193_v6, %v188_v4  ;;  %v195_v8 = vpop.f32.mrb[3].mxu0 }
 0x105   :  { %499 = vmatpush3.bf16.msra.mxu1 %v498_v7 }
 0x106   :  { %v198_v9 = vpop.f32.mrb[4].mxu0  ;;  %500 = vmatprep.subr.bf16.mxu1 %v536_v0 }
 0x107   :  { %v200_v10 = vpop.f32.mrb[5].mxu0 }
 0x10a   :  { %v203_v11 = vpop.f32.mrb[6].mxu0 }
 0x10b   :  { %v501_v12 = vpack.c.bf16 %v203_v11, %v198_v9  ;;  %v205_v13 = vpop.f32.mrb[7].mxu0 }
 0x10d   :  { %502 = vmatpush3.bf16.msra.mxu1 %v501_v12 }
 0x10e   :  { %v208_v14 = vpop.f32.mrb[8].mxu0  ;;  %503 = vmatprep.subr.bf16.mxu1 %v536_v0 }
 0x10f   :  { %v210_v15 = vpop.f32.mrb[9].mxu0 }
 0x112   :  { %v213_v16 = vpop.f32.mrb[10].mxu0 }
 0x113   :  { %v504_v17 = vpack.c.bf16 %v213_v16, %v208_v14  ;;  %v215_v18 = vpop.f32.mrb[11].mxu0 }
 0x115   :  { %505 = vmatpush3.bf16.msra.mxu1 %v504_v17 }
 0x116   :  { %v218_v19 = vpop.f32.mrb[12].mxu0  ;;  %506 = vmatprep.subr.bf16.mxu1 %v536_v0 }
 0x117   :  { %v220_v20 = vpop.f32.mrb[13].mxu0 }
 0x11a   :  { %v223_v21 = vpop.f32.mrb[14].mxu0 }
 0x11b   :  { %v507_v22 = vpack.c.bf16 %v223_v21, %v218_v19  ;;  %v225_v23 = vpop.f32.mrb[15].mxu0 }
 0x11d   :  { %508 = vmatpush3.bf16.msra.mxu1 %v507_v22 }
 0x11e   :  { %v228_v24 = vpop.f32.mrb[16].mxu0  ;;  %509 = vmatprep.subr.bf16.mxu1 %v536_v0 }
 0x11f   :  { %v230_v25 = vpop.f32.mrb[17].mxu0 }
 0x122   :  { %v233_v26 = vpop.f32.mrb[18].mxu0 }
 0x123   :  { %v510_v27 = vpack.c.bf16 %v233_v26, %v228_v24  ;;  %v235_v28 = vpop.f32.mrb[19].mxu0 }
 0x125   :  { %511 = vmatpush3.bf16.msra.mxu1 %v510_v27 }
 0x126   :  { %v238_v29 = vpop.f32.mrb[20].mxu0  ;;  %512 = vmatprep.subr.bf16.mxu1 %v536_v0 }
 0x127   :  { %v240_v30 = vpop.f32.mrb[21].mxu0 }
 0x12a   :  { %v243_v31 = vpop.f32.mrb[22].mxu0 }
 0x12b   :  { %v513_v32 = vpack.c.bf16 %v243_v31, %v238_v29  ;;  %v245_v33 = vpop.f32.mrb[23].mxu0 }
 0x12d   :  { %514 = vmatpush3.bf16.msra.mxu1 %v513_v32 }
 0x12e   :  { %v248_v34 = vpop.f32.mrb[24].mxu0  ;;  %515 = vmatprep.subr.bf16.mxu1 %v536_v0 }
 0x12f   :  { %v250_v35 = vpop.f32.mrb[25].mxu0 }
 0x132   :  { %v253_v36 = vpop.f32.mrb[26].mxu0 }
 0x133   :  { %v516_v37 = vpack.c.bf16 %v253_v36, %v248_v34  ;;  %v255_v38 = vpop.f32.mrb[27].mxu0 }
 0x135   :  { %517 = vmatpush3.bf16.msra.mxu1 %v516_v37 }
 0x136   :  { %v258_v40 = vpop.f32.mrb[28].mxu0  ;;  %518 = vmatprep.subr.bf16.mxu1 %v536_v0  ;;  %v353_v0 = vshrl.u32 %v267_v39, 7 }
 0x137   :  { %v260_v41 = vpop.f32.mrb[29].mxu0 }
 0x138   :  { %v363_v52 = vsub.s32 1, %v353_v0  ;;  %v354_v53 = vsub.s32 0, %v353_v0  ;;  %v373_v57 = vsub.s32 2, %v353_v0  ;;  %v379_v63 = vsub.s32 3, %v353_v0 }
 0x13a   :  { %v263_v43 = vpop.f32.mrb[30].mxu0  ;;  %v364_v55 = vrot.slane %v346_v54, %v363_v52  ;;  %v355_v56 = vrot.slane %v346_v54, %v354_v53  ;;  %v374_v62 = vrot.slane %v346_v54, %v373_v57  ;;  %v380_v3 = vrot.slane %v346_v54, %v379_v63 }
 0x13b   :  { %v519_v45 = vpack.c.bf16 %v263_v43, %v258_v40  ;;  %v265_v46 = vpop.f32.mrb[31].mxu0 }
 0x13d   :  { %520 = vmatpush3.bf16.msra.mxu1 %v519_v45 }
 0x140   :  { %464 = vmatmul.mubr.msk.f32.vlgmr.msra.gmra.mrb[0].mxu1 %vm273_vm5, %v542_v47 }
 0x213   :  { %v342_v48 = vpop.f32.mrb[0].mxu1 }
 0x214   :  { %358 = vperm.xlu1 %531, %v342_v48   ;;  %349 = vperm.xlu0 %530, %v342_v48   ;;  %v465_v49 = vpop.f32.mrb[1].mxu1 }
 0x218   :  { %532 = vset.pattern.permute.xlu1 %v543_v50  ;;  %533 = vset.pattern.permute.xlu0 %v544_v51 }
 0x219   :  { %368 = vperm.xlu1 %532, %v342_v48  }
 0x293   :  { %v359_v58 = vpop.permute.xlu1 %358  ;;  %v350_v59 = vpop.permute.xlu0 %349 }
 0x294   :  { %v365_v60 = vmul.f32 %v364_v55, %v359_v58  ;;  %v356_v61 = vmul.f32 %v355_v56, %v350_v59 }
 0x296   :  { %v366_v2 = vadd.f32 %v365_v60, %v356_v61 }
 0x298   :  { %v369_v1 = vpop.permute.xlu1 %368 }
 0x299   :  { %v375_v4 = vmul.f32 %v374_v62, %v369_v1 }
 0x29b   :  { %v376_v5 = vadd.f32 %v375_v4, %v366_v2 }
 0x29d   :  { %v381_v6 = vadd.f32 %v380_v3, %v376_v5 }
 0x29f   :  { %534 = vrcp.f32 %v381_v6 }
 0x2a9   :  { %v535_v7 = vpop.eup %534 }
 0x2aa   :  { %385 = vperm.xlu0 %533, %v535_v7  }
 0x329   :  { %v386_v8 = vpop.permute.xlu0 %385 }
 0x32a   :  { %v388_v9 = vmul.f32 %v386_v8, %v381_v6 }
 0x32c   :  { %390 = vst.msk [vmem:[%s773_s4] sm:$0xff] %vm389_vm6, %v388_v9 }

</bundles_post_ra>
